<compile_context>
chip_gen: v7x
topology: tpu7x:2x2x1
jax: 0.10.0
libtpu: 0.0.40
codegen_flags: <defaults>
</compile_context>

<pallas_src>
import jax
import jax.numpy as jnp
from jax.experimental import pallas as pl
from jax.experimental.pallas import tpu as pltpu


def _mlp_kernel_fused(tau_ref, cond_ref, w1_ref, b1_ref, w2_ref, b2_ref,
                      o_ref, x_ref):
    """Layer 1 as a single K=2E matmul (E lane-aligned)."""
    E = tau_ref.shape[1]
    # Fused concat: stage [tau | cond] into VMEM with two lane-aligned stores
    # so layer 1 is one K=2E contraction (fills the 256-deep MXU on v6e/v7x).
    x_ref[:, :E] = tau_ref[...]
    x_ref[:, E:] = cond_ref[...]
    h = jnp.dot(x_ref[...], w1_ref[...], preferred_element_type=jnp.float32)
    h = h + b1_ref[...].astype(jnp.float32)
    # SiLU in f32: exp goes to the EUP slot, mul to the VPU — free under
    # MXU / DMA slack.
    h = h * jax.nn.sigmoid(h)
    w2 = w2_ref[...]
    o = jnp.dot(h.astype(w2.dtype), w2, preferred_element_type=jnp.float32)
    o_ref[...] = (o + b2_ref[...].astype(jnp.float32)).astype(o_ref.dtype)


def _mlp_kernel_split(tau_ref, cond_ref, w1_ref, b1_ref, w2_ref, b2_ref,
                      o_ref):
    """Layer 1 as two partial dots (small / non-lane-aligned E; v5e-optimal)."""
    E = tau_ref.shape[1]
    # cat([tau, cond]) @ W1 == tau @ W1[:E] + cond @ W1[E:].  The static
    # slices of the resident (2E, H) W1 ref are free (no copy, no HBM pass).
    h = jnp.dot(tau_ref[...], w1_ref[:E, :], preferred_element_type=jnp.float32)
    h = h + jnp.dot(cond_ref[...], w1_ref[E:, :],
                    preferred_element_type=jnp.float32)
    h = h + b1_ref[...].astype(jnp.float32)
    h = h * jax.nn.sigmoid(h)
    w2 = w2_ref[...]
    o = jnp.dot(h.astype(w2.dtype), w2, preferred_element_type=jnp.float32)
    o_ref[...] = (o + b2_ref[...].astype(jnp.float32)).astype(o_ref.dtype)


def _pick_batch_tile(B, per_row_bytes, budget=24 << 20):
    """Largest lane/sublane-dense tile fitting the VMEM budget; guarantees
    >= 2 grid steps whenever B >= 16 so both v7x TensorCores get work."""
    for cand in (2048, 1024, 512, 256, 128):
        if B >= 2 * cand and B % cand == 0 and cand * per_row_bytes <= budget:
            return cand
    if B >= 16:
        half = -(-B // 2)              # ceil(B / 2)
        half = -(-half // 8) * 8       # round up to a multiple of 8
        while half > 8 and half * per_row_bytes > budget:
            half = -(-(half // 2) // 8) * 8
        if half < B:
            return half
    return B


def conditioning_mlp(tau_embed, cond_embed, w1, b1, w2, b2, *,
                     mxu_dtype=jnp.bfloat16, out_dtype=None, batch_tile=None,
                     single_buffer_weights=True):
    """Pallas implementation of ConditioningMLP.forward.

    tau_embed, cond_embed : (B, E)
    w1 : (2E, H), b1 : (H,), w2 : (H, H), b2 : (H,)
    mxu_dtype : dtype for MXU operands only (default bf16; accumulation,
                bias add and SiLU stay f32). Pass None for full-f32 operands.
                If callers already hold bf16 activations/weights, no cast is
                emitted at all (preferred: pass bf16 in from the model).
    out_dtype : output dtype (default: tau_embed.dtype).
    """
    B, E = tau_embed.shape
    in_dim, H = w1.shape
    assert in_dim == 2 * E, "w1 must have shape (2*E, H)"
    assert cond_embed.shape == (B, E)
    out_dtype = tau_embed.dtype if out_dtype is None else out_dtype

    def cast(x):
        return x if (mxu_dtype is None or x.dtype == mxu_dtype) else x.astype(mxu_dtype)

    tau, cond, w1c, w2c = cast(tau_embed), cast(cond_embed), cast(w1), cast(w2)
    # Biases as (1, H) f32: clean (sublane, lane) mapping, f32 adds.
    b1_2d = b1.reshape(1, H).astype(jnp.float32)
    b2_2d = b2.reshape(1, H).astype(jnp.float32)

    a_it = jnp.dtype(tau.dtype).itemsize
    o_it = jnp.dtype(out_dtype).itemsize
    w_it = jnp.dtype(w1c.dtype).itemsize

    # Single K=2E matmul needs the staged concat at a lane-aligned offset;
    # otherwise use the two-partial-dot kernel (already optimal on v5e).
    fused = (E % 128 == 0)

    # Per-batch-row VMEM bytes: 2x double-buffered (tile, E) inputs,
    # double-buffered (tile, H) output, plus the (tile, 2E) staging scratch.
    per_row = 2 * (2 * E * a_it) + 2 * H * o_it + (2 * E * a_it if fused else 0)
    if batch_tile is None:
        batch_tile = _pick_batch_tile(B, per_row)
    batch_tile = min(batch_tile, B)
    grid = (pl.cdiv(B, batch_tile),)

    # Explicit VMEM budget (conservative: assume double-buffered weights).
    weight_bytes = 2 * ((w1c.size + w2c.size) * w_it + 2 * H * 4)
    vmem_limit = int(1.5 * (weight_bytes + batch_tile * per_row)) + (2 << 20)
    vmem_limit = max(16 << 20, min(vmem_limit, 64 << 20))

    # Advisory cost estimate for XLA's scheduler.
    flops = 2 * B * (2 * E * H + H * H)
    bytes_accessed = ((tau.size + cond.size) * a_it
                      + (w1c.size + w2c.size) * w_it
                      + 2 * H * 4
                      + B * H * o_it)
    cost = pl.CostEstimate(flops=flops, transcendentals=B * H,
                           bytes_accessed=bytes_accessed)

    kernel = _mlp_kernel_fused if fused else _mlp_kernel_split
    scratch = [pltpu.VMEM((batch_tile, 2 * E), tau.dtype)] if fused else []

    def build(single_buffer):
        def wspec(shape):
            kw = {"pipeline_mode": pl.Buffered(1)} if single_buffer else {}
            return pl.BlockSpec(shape, lambda i: (0, 0), **kw)
        return pl.pallas_call(
            kernel,
            out_shape=jax.ShapeDtypeStruct((B, H), out_dtype),
            grid=grid,
            in_specs=[
                pl.BlockSpec((batch_tile, E), lambda i: (i, 0)),  # tau
                pl.BlockSpec((batch_tile, E), lambda i: (i, 0)),  # cond
                wspec((2 * E, H)),                                # W1 (resident)
                wspec((1, H)),                                    # b1
                wspec((H, H)),                                    # W2 (resident)
                wspec((1, H)),                                    # b2
            ],
            out_specs=pl.BlockSpec((batch_tile, H), lambda i: (i, 0)),
            scratch_shapes=scratch,
            compiler_params=pltpu.CompilerParams(
                dimension_semantics=("parallel",),
                vmem_limit_bytes=vmem_limit),
            cost_estimate=cost,
        )

    args = (tau, cond, w1c, b1_2d, w2c, b2_2d)
    if single_buffer_weights:
        try:
            return build(True)(*args)
        except Exception:
            # Some Pallas builds reject buffer_count=1; fall back to the
            # default double-buffered weight specs (still constant index_map,
            # so still no per-step re-DMA).
            pass
    return build(False)(*args)


def _reference(tau_embed, cond_embed, w1, b1, w2, b2):
    x = jnp.concatenate([tau_embed, cond_embed], axis=1)
    h = x @ w1 + b1
    h = h * jax.nn.sigmoid(h)
    return h @ w2 + b2


if __name__ == "__main__":
    key = jax.random.PRNGKey(0)
    k_tau, k_cond, k_w1, k_b1, k_w2, k_b2 = jax.random.split(key, 6)

    # --- Small shapes consistent with the module (split-dot path). --------
    # NOTE: at H < 128 the output stores are masked partials and the call is
    # overhead-dominated; in the real model this MLP should be fused into the
    # adjacent kernel or batched so the lane dim reaches >= 128.
    batch, embed_dim, hidden_size = 8, 16, 32
    input_dim = embed_dim * 2

    tau_embed = jax.random.normal(k_tau, (batch, embed_dim), jnp.float32)
    cond_embed = jax.random.normal(k_cond, (batch, embed_dim), jnp.float32)
    w1 = jax.random.normal(k_w1, (input_dim, hidden_size), jnp.float32) * 0.05
    b1 = jax.random.normal(k_b1, (hidden_size,), jnp.float32) * 0.05
    w2 = jax.random.normal(k_w2, (hidden_size, hidden_size), jnp.float32) * 0.05
    b2 = jax.random.normal(k_b2, (hidden_size,), jnp.float32) * 0.05
    ref = _reference(tau_embed, cond_embed, w1, b1, w2, b2)

    out_f32 = jax.block_until_ready(
        conditioning_mlp(tau_embed, cond_embed, w1, b1, w2, b2, mxu_dtype=None))
    assert out_f32.shape == (batch, hidden_size)
    assert jnp.allclose(out_f32, ref, atol=1e-5, rtol=1e-5), "small f32 mismatch"

    out_def = jax.block_until_ready(                      # default bf16-MXU path
        conditioning_mlp(tau_embed, cond_embed, w1, b1, w2, b2))
    assert out_def.dtype == jnp.float32
    assert jnp.allclose(out_def, ref, atol=5e-2, rtol=5e-2), "small bf16 mismatch"

    # --- Larger, lane-dense case: fused K=2E path, >=2 batch grid steps. ---
    B2, E2, H2 = 256, 128, 256
    k2 = jax.random.split(jax.random.PRNGKey(1), 6)
    tau2 = jax.random.normal(k2[0], (B2, E2), jnp.float32)
    cond2 = jax.random.normal(k2[1], (B2, E2), jnp.float32)
    w1_2 = jax.random.normal(k2[2], (2 * E2, H2), jnp.float32) * 0.05
    b1_2 = jax.random.normal(k2[3], (H2,), jnp.float32) * 0.05
    w2_2 = jax.random.normal(k2[4], (H2, H2), jnp.float32) * 0.05
    b2_2 = jax.random.normal(k2[5], (H2,), jnp.float32) * 0.05
    ref2 = _reference(tau2, cond2, w1_2, b1_2, w2_2, b2_2)

    out2_f32 = jax.block_until_ready(
        conditioning_mlp(tau2, cond2, w1_2, b1_2, w2_2, b2_2, mxu_dtype=None))
    assert out2_f32.shape == (B2, H2)
    assert jnp.allclose(out2_f32, ref2, atol=2e-2, rtol=2e-2), "big f32 mismatch"

    out2_def = jax.block_until_ready(                     # default bf16-MXU path
        conditioning_mlp(tau2, cond2, w1_2, b1_2, w2_2, b2_2))
    assert jnp.allclose(out2_def, ref2, atol=5e-2, rtol=5e-2), "big bf16 mismatch"

    # Ragged batch (non-divisible B): cdiv grid + masked last tile.
    out3 = jax.block_until_ready(
        conditioning_mlp(tau2[:200], cond2[:200], w1_2, b1_2, w2_2, b2_2))
    assert out3.shape == (200, H2)
    assert jnp.allclose(out3, ref2[:200], atol=5e-2, rtol=5e-2), "ragged mismatch"

    print("KERNEL_OK")
</pallas_src>

<mosaic_0001>
module attributes {stable_mosaic.version = 11 : i64} {
  func.func @_mlp_kernel_split(%arg0: i32, %arg1: memref<8x16xf32, #tpu.memory_space<vmem>>, %arg2: memref<8x16xf32, #tpu.memory_space<vmem>>, %arg3: memref<32x32xf32, #tpu.memory_space<vmem>>, %arg4: memref<1x32xf32, #tpu.memory_space<vmem>>, %arg5: memref<32x32xf32, #tpu.memory_space<vmem>>, %arg6: memref<1x32xf32, #tpu.memory_space<vmem>>, %arg7: memref<8x32xf32, #tpu.memory_space<vmem>>) attributes {dimension_semantics = [#tpu.dimension_semantics<parallel>], iteration_bounds = array<i64: 1>, scalar_prefetch = 0 : i64, scratch_operands = 0 : i64, tpu.core_type = #tpu.core_type<tc>, window_params = [{transform_indices = @transform_0, window_bounds = array<i64: 8, 16>}, {transform_indices = @transform_1, window_bounds = array<i64: 8, 16>}, {pipeline_mode = #tpu.pipeline_mode<synchronous>, transform_indices = @transform_2, window_bounds = array<i64: 32, 32>}, {pipeline_mode = #tpu.pipeline_mode<synchronous>, transform_indices = @transform_3, window_bounds = array<i64: 1, 32>}, {pipeline_mode = #tpu.pipeline_mode<synchronous>, transform_indices = @transform_4, window_bounds = array<i64: 32, 32>}, {pipeline_mode = #tpu.pipeline_mode<synchronous>, transform_indices = @transform_5, window_bounds = array<i64: 1, 32>}, {transform_indices = @transform_6, window_bounds = array<i64: 8, 32>}]} {
    %c0 = arith.constant 0 : index
    %c0_0 = arith.constant 0 : index
    %0 = vector.load %arg1[%c0, %c0_0] : memref<8x16xf32, #tpu.memory_space<vmem>>, vector<8x16xf32>
    %c0_1 = arith.constant 0 : index
    %c0_2 = arith.constant 0 : index
    %1 = vector.load %arg3[%c0_1, %c0_2] : memref<32x32xf32, #tpu.memory_space<vmem>>, vector<16x32xf32>
    %cst = arith.constant dense<0.000000e+00> : vector<8x32xf32>
    %2 = tpu.matmul %0, %1, %cst {dimension_numbers = #tpu.dot_dimension_numbers<[1], [0], [0], [1], [0, 0, 1, 1], [], []>} : vector<8x16xf32>, vector<16x32xf32>, vector<8x32xf32> -> vector<8x32xf32>
    %c0_3 = arith.constant 0 : index
    %c0_4 = arith.constant 0 : index
    %3 = vector.load %arg2[%c0_3, %c0_4] : memref<8x16xf32, #tpu.memory_space<vmem>>, vector<8x16xf32>
    %c16 = arith.constant 16 : index
    %c0_5 = arith.constant 0 : index
    %4 = vector.load %arg3[%c16, %c0_5] : memref<32x32xf32, #tpu.memory_space<vmem>>, vector<16x32xf32>
    %cst_6 = arith.constant dense<0.000000e+00> : vector<8x32xf32>
    %5 = tpu.matmul %3, %4, %cst_6 {dimension_numbers = #tpu.dot_dimension_numbers<[1], [0], [0], [1], [0, 0, 1, 1], [], []>} : vector<8x16xf32>, vector<16x32xf32>, vector<8x32xf32> -> vector<8x32xf32>
    %6 = arith.addf %2, %5 : vector<8x32xf32>
    %c0_7 = arith.constant 0 : index
    %c0_8 = arith.constant 0 : index
    %7 = vector.load %arg4[%c0_7, %c0_8] : memref<1x32xf32, #tpu.memory_space<vmem>>, vector<1x32xf32>
    %8 = vector.broadcast %7 : vector<1x32xf32> to vector<8x32xf32>
    %9 = arith.addf %6, %8 : vector<8x32xf32>
    %10 = arith.negf %9 : vector<8x32xf32>
    %11 = math.exp %10 : vector<8x32xf32>
    %cst_9 = arith.constant 1.000000e+00 : f32
    %12 = vector.broadcast %cst_9 : f32 to vector<8x32xf32>
    %13 = arith.addf %12, %11 : vector<8x32xf32>
    %14 = arith.divf %12, %13 : vector<8x32xf32>
    %15 = arith.mulf %9, %14 : vector<8x32xf32>
    %c0_10 = arith.constant 0 : index
    %c0_11 = arith.constant 0 : index
    %16 = vector.load %arg5[%c0_10, %c0_11] : memref<32x32xf32, #tpu.memory_space<vmem>>, vector<32x32xf32>
    %cst_12 = arith.constant dense<0.000000e+00> : vector<8x32xf32>
    %17 = tpu.matmul %15, %16, %cst_12 {dimension_numbers = #tpu.dot_dimension_numbers<[1], [0], [0], [1], [0, 0, 1, 1], [], []>} : vector<8x32xf32>, vector<32x32xf32>, vector<8x32xf32> -> vector<8x32xf32>
    %c0_13 = arith.constant 0 : index
    %c0_14 = arith.constant 0 : index
    %18 = vector.load %arg6[%c0_13, %c0_14] : memref<1x32xf32, #tpu.memory_space<vmem>>, vector<1x32xf32>
    %19 = vector.broadcast %18 : vector<1x32xf32> to vector<8x32xf32>
    %20 = arith.addf %17, %19 : vector<8x32xf32>
    %c0_15 = arith.constant 0 : index
    %c0_16 = arith.constant 0 : index
    %21 = vector.load %arg7[%c0_15, %c0_16] : memref<8x32xf32, #tpu.memory_space<vmem>>, vector<8x32xf32>
    tpu.vector_store %arg7[%c0_15, %c0_16], %20 {strides = array<i32>} : memref<8x32xf32, #tpu.memory_space<vmem>>, vector<8x32xf32>,
    return
  }
  func.func @transform_0(%arg0: i32) -> (i32, i32) {
    %c0_i32 = arith.constant 0 : i32
    %c0_i32_0 = arith.constant 0 : i32
    return %arg0, %c0_i32 : i32, i32
  }
  func.func @transform_1(%arg0: i32) -> (i32, i32) {
    %c0_i32 = arith.constant 0 : i32
    %c0_i32_0 = arith.constant 0 : i32
    return %arg0, %c0_i32 : i32, i32
  }
  func.func @transform_2(%arg0: i32) -> (i32, i32) {
    %c0_i32 = arith.constant 0 : i32
    %c0_i32_0 = arith.constant 0 : i32
    %c0_i32_1 = arith.constant 0 : i32
    return %c0_i32, %c0_i32_0 : i32, i32
  }
  func.func @transform_3(%arg0: i32) -> (i32, i32) {
    %c0_i32 = arith.constant 0 : i32
    %c0_i32_0 = arith.constant 0 : i32
    %c0_i32_1 = arith.constant 0 : i32
    return %c0_i32, %c0_i32_0 : i32, i32
  }
  func.func @transform_4(%arg0: i32) -> (i32, i32) {
    %c0_i32 = arith.constant 0 : i32
    %c0_i32_0 = arith.constant 0 : i32
    %c0_i32_1 = arith.constant 0 : i32
    return %c0_i32, %c0_i32_0 : i32, i32
  }
  func.func @transform_5(%arg0: i32) -> (i32, i32) {
    %c0_i32 = arith.constant 0 : i32
    %c0_i32_0 = arith.constant 0 : i32
    %c0_i32_1 = arith.constant 0 : i32
    return %c0_i32, %c0_i32_0 : i32, i32
  }
  func.func @transform_6(%arg0: i32) -> (i32, i32) {
    %c0_i32 = arith.constant 0 : i32
    %c0_i32_0 = arith.constant 0 : i32
    return %arg0, %c0_i32 : i32, i32
  }
}

module attributes {stable_mosaic.version = 11 : i64} {
  func.func @_mlp_kernel_split(%arg0: i32, %arg1: memref<8x16xf32, #tpu.memory_space<vmem>>, %arg2: memref<8x16xf32, #tpu.memory_space<vmem>>, %arg3: memref<32x32xf32, #tpu.memory_space<vmem>>, %arg4: memref<1x32xf32, #tpu.memory_space<vmem>>, %arg5: memref<32x32xf32, #tpu.memory_space<vmem>>, %arg6: memref<1x32xf32, #tpu.memory_space<vmem>>, %arg7: memref<8x32xf32, #tpu.memory_space<vmem>>) attributes {dimension_semantics = [#tpu.dimension_semantics<parallel>], iteration_bounds = array<i64: 1>, scalar_prefetch = 0 : i64, scratch_operands = 0 : i64, tpu.core_type = #tpu.core_type<tc>, window_params = [{transform_indices = @transform_0, window_bounds = array<i64: 8, 16>}, {transform_indices = @transform_1, window_bounds = array<i64: 8, 16>}, {pipeline_mode = #tpu.pipeline_mode<synchronous>, transform_indices = @transform_2, window_bounds = array<i64: 32, 32>}, {pipeline_mode = #tpu.pipeline_mode<synchronous>, transform_indices = @transform_3, window_bounds = array<i64: 1, 32>}, {pipeline_mode = #tpu.pipeline_mode<synchronous>, transform_indices = @transform_4, window_bounds = array<i64: 32, 32>}, {pipeline_mode = #tpu.pipeline_mode<synchronous>, transform_indices = @transform_5, window_bounds = array<i64: 1, 32>}, {transform_indices = @transform_6, window_bounds = array<i64: 8, 32>}]} {
    %c0 = arith.constant 0 : index
    %c0_0 = arith.constant 0 : index
    %0 = vector.load %arg1[%c0, %c0_0] : memref<8x16xf32, #tpu.memory_space<vmem>>, vector<8x16xf32>
    %c0_1 = arith.constant 0 : index
    %c0_2 = arith.constant 0 : index
    %1 = vector.load %arg3[%c0_1, %c0_2] : memref<32x32xf32, #tpu.memory_space<vmem>>, vector<16x32xf32>
    %cst = arith.constant dense<0.000000e+00> : vector<8x32xf32>
    %2 = tpu.matmul %0, %1, %cst {dimension_numbers = #tpu.dot_dimension_numbers<[1], [0], [0], [1], [0, 0, 1, 1], [], []>} : vector<8x16xf32>, vector<16x32xf32>, vector<8x32xf32> -> vector<8x32xf32>
    %c0_3 = arith.constant 0 : index
    %c0_4 = arith.constant 0 : index
    %3 = vector.load %arg2[%c0_3, %c0_4] : memref<8x16xf32, #tpu.memory_space<vmem>>, vector<8x16xf32>
    %c16 = arith.constant 16 : index
    %c0_5 = arith.constant 0 : index
    %4 = vector.load %arg3[%c16, %c0_5] : memref<32x32xf32, #tpu.memory_space<vmem>>, vector<16x32xf32>
    %cst_6 = arith.constant dense<0.000000e+00> : vector<8x32xf32>
    %5 = tpu.matmul %3, %4, %cst_6 {dimension_numbers = #tpu.dot_dimension_numbers<[1], [0], [0], [1], [0, 0, 1, 1], [], []>} : vector<8x16xf32>, vector<16x32xf32>, vector<8x32xf32> -> vector<8x32xf32>
    %6 = arith.addf %2, %5 : vector<8x32xf32>
    %c0_7 = arith.constant 0 : index
    %c0_8 = arith.constant 0 : index
    %7 = vector.load %arg4[%c0_7, %c0_8] : memref<1x32xf32, #tpu.memory_space<vmem>>, vector<1x32xf32>
    %8 = vector.broadcast %7 : vector<1x32xf32> to vector<8x32xf32>
    %9 = arith.addf %6, %8 : vector<8x32xf32>
    %10 = arith.negf %9 : vector<8x32xf32>
    %11 = math.exp %10 : vector<8x32xf32>
    %cst_9 = arith.constant 1.000000e+00 : f32
    %12 = vector.broadcast %cst_9 : f32 to vector<8x32xf32>
    %13 = arith.addf %12, %11 : vector<8x32xf32>
    %14 = arith.divf %12, %13 : vector<8x32xf32>
    %15 = arith.mulf %9, %14 : vector<8x32xf32>
    %c0_10 = arith.constant 0 : index
    %c0_11 = arith.constant 0 : index
    %16 = vector.load %arg5[%c0_10, %c0_11] : memref<32x32xf32, #tpu.memory_space<vmem>>, vector<32x32xf32>
    %cst_12 = arith.constant dense<0.000000e+00> : vector<8x32xf32>
    %17 = tpu.matmul %15, %16, %cst_12 {dimension_numbers = #tpu.dot_dimension_numbers<[1], [0], [0], [1], [0, 0, 1, 1], [], []>} : vector<8x32xf32>, vector<32x32xf32>, vector<8x32xf32> -> vector<8x32xf32>
    %c0_13 = arith.constant 0 : index
    %c0_14 = arith.constant 0 : index
    %18 = vector.load %arg6[%c0_13, %c0_14] : memref<1x32xf32, #tpu.memory_space<vmem>>, vector<1x32xf32>
    %19 = vector.broadcast %18 : vector<1x32xf32> to vector<8x32xf32>
    %20 = arith.addf %17, %19 : vector<8x32xf32>
    %c0_15 = arith.constant 0 : index
    %c0_16 = arith.constant 0 : index
    %21 = vector.load %arg7[%c0_15, %c0_16] : memref<8x32xf32, #tpu.memory_space<vmem>>, vector<8x32xf32>
    tpu.vector_store %arg7[%c0_15, %c0_16], %20 {strides = array<i32>} : memref<8x32xf32, #tpu.memory_space<vmem>>, vector<8x32xf32>,
    return
  }
  func.func @transform_0(%arg0: i32) -> (i32, i32) {
    %c0_i32 = arith.constant 0 : i32
    %c0_i32_0 = arith.constant 0 : i32
    return %arg0, %c0_i32 : i32, i32
  }
  func.func @transform_1(%arg0: i32) -> (i32, i32) {
    %c0_i32 = arith.constant 0 : i32
    %c0_i32_0 = arith.constant 0 : i32
    return %arg0, %c0_i32 : i32, i32
  }
  func.func @transform_2(%arg0: i32) -> (i32, i32) {
    %c0_i32 = arith.constant 0 : i32
    %c0_i32_0 = arith.constant 0 : i32
    %c0_i32_1 = arith.constant 0 : i32
    return %c0_i32, %c0_i32_0 : i32, i32
  }
  func.func @transform_3(%arg0: i32) -> (i32, i32) {
    %c0_i32 = arith.constant 0 : i32
    %c0_i32_0 = arith.constant 0 : i32
    %c0_i32_1 = arith.constant 0 : i32
    return %c0_i32, %c0_i32_0 : i32, i32
  }
  func.func @transform_4(%arg0: i32) -> (i32, i32) {
    %c0_i32 = arith.constant 0 : i32
    %c0_i32_0 = arith.constant 0 : i32
    %c0_i32_1 = arith.constant 0 : i32
    return %c0_i32, %c0_i32_0 : i32, i32
  }
  func.func @transform_5(%arg0: i32) -> (i32, i32) {
    %c0_i32 = arith.constant 0 : i32
    %c0_i32_0 = arith.constant 0 : i32
    %c0_i32_1 = arith.constant 0 : i32
    return %c0_i32, %c0_i32_0 : i32, i32
  }
  func.func @transform_6(%arg0: i32) -> (i32, i32) {
    %c0_i32 = arith.constant 0 : i32
    %c0_i32_0 = arith.constant 0 : i32
    return %arg0, %c0_i32 : i32, i32
  }
}

</mosaic_0001>

<bundles_post_ra>
// kernel: tpu_custom_call.1
= control target key start
LH: loop header
LB: loop body
LE: loop exit
PB: predicated region body
PF: predicated region fallthrough
CT: control target
= control target key end

     0   :  { %11 = vsyncpa [#allocation3], 0  ;;  %s646_s0 = inlined_call_operand.hbm [shape: f32[8,16], index: 0, kind: input, shape index: {}]   ;;  %s647_s1 = inlined_call_operand.hbm [shape: f32[8,16], index: 1, kind: input, shape index: {}]   ;;  %s648_s2 = inlined_call_operand.hbm [shape: f32[32,32], index: 2, kind: input, shape index: {}]   ;;  %s649_s3 = inlined_call_operand.vmem [shape: f32[1,32], index: 3, kind: input, shape index: {}]   ;;  %s650_s4 = inlined_call_operand.hbm [shape: f32[32,32], index: 4, kind: input, shape index: {}]   ;;  %s651_s5 = inlined_call_operand.vmem [shape: f32[1,32], index: 5, kind: input, shape index: {}]   ;;  %s652_s6 = inlined_call_operand.hbm [shape: f32[8,32], index: 6, kind: output, shape index: {}]  }
   0x1   :  { %12 = vsyncpa [#allocation6], 0 }
   0x2   :  { %13 = vsyncpa [#allocation9], 0 }
   0x3   :  { %14 = vsyncpa [#allocation4], 0  ;;  %s532_s21 = smov [#allocation5]   ;;  %s533_s23 = smov [#allocation2]  }
   0x4   :  { %s31_s22 = sshll.u32 %s532_s21, 4  ;;  %s21_s24 = sshll.u32 %s533_s23, 4  ;;  %s32_s22 = int_to_ptr.vmem [resolvable:$true] %s31_s22  ;;  %s22_s24 = int_to_ptr.vmem [resolvable:$true] %s21_s24 }
   0x5   :  { %s414_s27 = scalar_lea.hbm %s647_s1, 128 }
   0x6   :  { %p415_p0 = scmp.ne.s32.totalorder %s647_s1, %s414_s27  ;;  %p418_p1 = scmp.lt.u32.totalorder %s414_s27, %s647_s1 }
   0x8   :  { %p420_p2 = pnand %p418_p1, %p415_p0 }
   0xa   :  { %423 = shalt.err (!%p420_p2)
}
   0xb   :  { %s424_s8 = scalar_lea.vmem %s32_s22, 128  ;;  %p429_p4 = scmp.lt.s32.totalorder %s32_s22, %s32_s22 }
   0xc   :  { %p425_p3 = scmp.ne.s32.totalorder %s32_s22, %s424_s8  ;;  %p430_p5 = scmp.lt.s32.totalorder %s424_s8, %s424_s8 }
   0xe   :  { %p431_p6 = por %p430_p5, %p429_p4 }
  0x10   :  { %p432_p7 = pnand %p431_p6, %p425_p3 }
  0x12   :  { %435 = shalt.err (!%p432_p7)
}
  0x13   :  { %34 = dma.hbm_to_vmem [thread:$0]  %s647_s1, 128, %s32_s22, [#allocation6]  }
  0x14   :  { %s436_s13 = scalar_lea.hbm %s646_s0, 128 }
  0x15   :  { %p437_p8 = scmp.ne.s32.totalorder %s646_s0, %s436_s13  ;;  %p440_p9 = scmp.lt.u32.totalorder %s436_s13, %s646_s0 }
  0x17   :  { %p442_p10 = pnand %p440_p9, %p437_p8 }
  0x19   :  { %445 = shalt.err (!%p442_p10)
}
  0x1a   :  { %s446_s18 = scalar_lea.vmem %s22_s24, 128  ;;  %p451_p12 = scmp.lt.s32.totalorder %s22_s24, %s22_s24 }
  0x1b   :  { %p447_p11 = scmp.ne.s32.totalorder %s22_s24, %s446_s18  ;;  %p452_p13 = scmp.lt.s32.totalorder %s446_s18, %s446_s18 }
  0x1d   :  { %p453_p0 = por %p452_p13, %p451_p12 }
  0x1f   :  { %p454_p1 = pnand %p453_p0, %p447_p11 }
  0x21   :  { %457 = shalt.err (!%p454_p1)
}
  0x22   :  { %24 = dma.hbm_to_vmem [thread:$0]  %s646_s0, 128, %s22_s24, [#allocation3]  }
  0x23   :  { %s534_s20 = smov [#allocation7]   ;;  %s458_s25 = scalar_lea.hbm %s648_s2, 512 }
  0x24   :  { %s40_s21 = sshll.u32 %s534_s20, 4  ;;  %p459_p2 = scmp.ne.s32.totalorder %s648_s2, %s458_s25  ;;  %s41_s21 = int_to_ptr.vmem [resolvable:$true] %s40_s21 }
  0x25   :  { %p462_p3 = scmp.lt.u32.totalorder %s458_s25, %s648_s2 }
  0x27   :  { %p464_p4 = pnand %p462_p3, %p459_p2 }
  0x29   :  { %467 = shalt.err (!%p464_p4)
}
  0x2a   :  { %s468_s30 = scalar_lea.vmem %s41_s21, 512  ;;  %p473_p6 = scmp.lt.s32.totalorder %s41_s21, %s41_s21 }
  0x2b   :  { %p469_p5 = scmp.ne.s32.totalorder %s41_s21, %s468_s30  ;;  %p474_p7 = scmp.lt.s32.totalorder %s468_s30, %s468_s30 }
  0x2d   :  { %p475_p8 = por %p474_p7, %p473_p6 }
  0x2f   :  { %p476_p9 = pnand %p475_p8, %p469_p5 }
  0x31   :  { %479 = shalt.err (!%p476_p9)
}
  0x32   :  { %s535_s0 = smov 128   ;;  %s536_s24 = smov 8  }
  0x33   :  { %46 = dma.hbm_to_vmem [thread:$0]  %s648_s2, 512, %s41_s21, [#allocation6], %s535_s0, %s535_s0, %s536_s24  }
  0x34   :  { %s537_s9 = smov [#allocation8]   ;;  %s480_s13 = scalar_lea.hbm %s650_s4, 512 }
  0x35   :  { %s54_s10 = sshll.u32 %s537_s9, 4  ;;  %p481_p10 = scmp.ne.s32.totalorder %s650_s4, %s480_s13  ;;  %s55_s10 = int_to_ptr.vmem [resolvable:$true] %s54_s10 }
  0x36   :  { %p484_p11 = scmp.lt.u32.totalorder %s480_s13, %s650_s4 }
  0x38   :  { %p486_p12 = pnand %p484_p11, %p481_p10 }
  0x3a   :  { %489 = shalt.err (!%p486_p12)
}
  0x3b   :  { %s490_s18 = scalar_lea.vmem %s55_s10, 512  ;;  %p495_p0 = scmp.lt.s32.totalorder %s55_s10, %s55_s10 }
  0x3c   :  { %p491_p13 = scmp.ne.s32.totalorder %s55_s10, %s490_s18  ;;  %p496_p1 = scmp.lt.s32.totalorder %s490_s18, %s490_s18 }
  0x3e   :  { %p497_p2 = por %p496_p1, %p495_p0 }
  0x40   :  { %p498_p3 = pnand %p497_p2, %p491_p13 }
  0x42   :  { %501 = shalt.err (!%p498_p3)
}
  0x43   :  { %60 = dma.hbm_to_vmem [thread:$0]  %s650_s4, 512, %s55_s10, [#allocation9], %s535_s0, %s535_s0, %s536_s24  }
  0x44   :  { %524 = dma.done.wait [#allocation3], 128  }
  0x45   :  { %525 = vsyncadd [#allocation3], 4294967168 }
  0x46   :  { %526 = dma.done.wait [#allocation6], 640  }
  0x47   :  { %527 = vsyncadd [#allocation6], 4294966656 }
  0x48   :  { %528 = dma.done.wait [#allocation9], 512  }
  0x49   :  { %529 = vsyncadd [#allocation9], 4294966784  ;;  %v538_v0 = vmov 0.0|0.0   ;;  %vm539_vm0 = vmmov 0   ;;  %v540_v1 = vmov 0.0   ;;  %v79_v2 = vld [vmem:[#allocation7 + $0x10] sm:$0xff] }
  0x4a   :  { %388 = vmatprep.subr.bf16.mxu1 %v538_v0  ;;  %367 = vmatprep.mubr.msk.f32.mxu1 %vm539_vm0, %v540_v1  ;;  %v80_v3 = vld [vmem:[#allocation7 + $0x18] sm:$0xff]  ;;  %v76_v5 = vld [vmem:[#allocation7] sm:$0xff]  ;;  %v77_v6 = vld [vmem:[#allocation7 + $0x8] sm:$0xff]  ;;  %vm81_vm1 = vcmask 130048   ;;  %vm254_vm2 = vcmask 261120   ;;  %s541_s22 = smov [#allocation10]  }
  0x4b   :  { %394 = vmatprep.subr.bf16.mxu0 %v538_v0  ;;  %385 = vmatprep.mubr.msk.f32.mxu0 %vm539_vm0, %v540_v1  ;;  %v389_v4 = vpack.c.bf16 %v80_v3, %v79_v2  ;;  %v78_v7 = vld [vmem:[#allocation5] sm:$0xff]  ;;  %v392_v8 = vpack.c.bf16 %v77_v6, %v76_v5  ;;  %v75_v9 = vld [vmem:[#allocation2] sm:$0xff]  ;;  %v243_v10 = vld [vmem:[#allocation8] sm:$0xff]  ;;  %s335_s23 = sshll.u32 %s541_s22, 4  ;;  %s336_s23 = int_to_ptr.vmem [resolvable:$true] %s335_s23 }
  0x4c   :  { %v244_v11 = vld [vmem:[#allocation8 + $0x8] sm:$0xff]  ;;  %v245_v13 = vld [vmem:[#allocation8 + $0x10] sm:$0xff]  ;;  %v246_v14 = vld [vmem:[#allocation8 + $0x18] sm:$0xff]  ;;  %p507_p5 = scmp.lt.s32.totalorder %s336_s23, %s336_s23 }
  0x4d   :  { %390 = vmatpush3.bf16.msra.mxu1 %v389_v4  ;;  %v395_v12 = vpack.c.bf16 %v244_v11, %v243_v10  ;;  %v398_v15 = vpack.c.bf16 %v246_v14, %v245_v13  ;;  %v348_v19 = vld [vmem:[%s649_s3] ss:$0 sm:$0xff]  ;;  %s502_s3 = scalar_lea.vmem %s336_s23, 128 }
  0x4e   :  { %391 = vmatprep.subr.bf16.mxu1 %v538_v0  ;;  %v350_v28 = vld [vmem:[%s651_s5] ss:$0 sm:$0xff]  ;;  %p503_p4 = scmp.ne.s32.totalorder %s336_s23, %s502_s3  ;;  %p508_p6 = scmp.lt.s32.totalorder %s502_s3, %s502_s3 }
  0x4f   :  { %396 = vmatpush3.bf16.msra.mxu0 %v395_v12 }
  0x50   :  { %368 = vmatmul.mubr.msk.f32.vlgmr.msra.gmra.mrb[0].mxu1 %vm81_vm1, %v78_v7  ;;  %397 = vmatprep.subr.bf16.mxu0 %v538_v0  ;;  %p509_p7 = por %p508_p6, %p507_p5 }
  0x51   :  { %393 = vmatpush3.bf16.msra.mxu1 %v392_v8  ;;  %374 = vmatprep.mubr.msk.f32.mxu1 %vm539_vm0, %v540_v1 }
  0x52   :  { %p510_p8 = pnand %p509_p7, %p503_p4 }
  0x53   :  { %399 = vmatpush3.bf16.msra.mxu0 %v398_v15 }
  0x54   :  { %375 = vmatmul.mubr.msk.f32.vlgmr.msra.gmra.mrb[2].mxu1 %vm81_vm1, %v75_v9 }
 0x123   :  { %v151_v16 = vpop.f32.mrb[0].mxu1 }
 0x124   :  { %v369_v17 = vpop.f32.mrb[1].mxu1 }
 0x127   :  { %v224_v18 = vpop.f32.mrb[2].mxu1 }
 0x128   :  { %v225_v20 = vadd.f32 %v224_v18, %v151_v16  ;;  %v376_v21 = vpop.f32.mrb[3].mxu1 }
 0x12a   :  { %v235_v22 = vadd.f32 %v348_v19, %v225_v20 }
 0x12c   :  { %v349_v23 = vmul.f32 -1.442695, %v235_v22 }
 0x12e   :  { %410 = vpow2.f32 %v349_v23 }
 0x138   :  { %v411_v24 = vpop.eup %410 }
 0x139   :  { %v239_v25 = vadd.f32 1.0, %v411_v24 }
 0x13b   :  { %412 = vrcp.f32 %v239_v25 }
 0x145   :  { %v413_v26 = vpop.eup %412 }
 0x146   :  { %v242_v27 = vmul.f32 %v413_v26, %v235_v22 }
 0x148   :  { %386 = vmatmul.mubr.msk.f32.vlgmr.msra.gmra.mrb[0].mxu0 %vm254_vm2, %v242_v27 }
 0x21b   :  { %v324_v29 = vpop.f32.mrb[0].mxu0 }
 0x21c   :  { %v325_v30 = vadd.f32 %v350_v28, %v324_v29  ;;  %v387_v31 = vpop.f32.mrb[1].mxu0 }
 0x21e   :  { %328 = vst.msk [vmem:[#allocation10] sm:$0xff] %vm254_vm2, %v325_v30 }
 0x21f   :  { %513 = shalt.err (!%p510_p8)
}
 0x220   :  { %s514_s27 = scalar_lea.hbm %s652_s6, 128 }
 0x221   :  { %p515_p9 = scmp.ne.s32.totalorder %s652_s6, %s514_s27  ;;  %p518_p10 = scmp.lt.u32.totalorder %s514_s27, %s652_s6 }
 0x223   :  { %p520_p11 = pnand %p518_p10, %p515_p9 }
 0x225   :  { %523 = shalt.err (!%p520_p11)
}
 0x226   :  { %338 = dma.vmem_to_hbm [thread:$0]  %s336_s23, 128, %s652_s6, [#allocation4]  }
 0x227   :  { %530 = dma.done.wait [#allocation4], 128  }
 0x228   :  { %531 = vsyncadd [#allocation4], 4294967168 }
 0x229   :  { %342 = vsyncpa [#allocation3], 1 }
 0x22a   :  { %343 = vsyncpa [#allocation6], 1 }
 0x22b   :  { %344 = vsyncpa [#allocation9], 1 }
 0x22c   :  { %345 = vsyncpa [#allocation4], 1 }

// kernel: tpu_custom_call.1
= control target key start
LH: loop header
LB: loop body
LE: loop exit
PB: predicated region body
PF: predicated region fallthrough
CT: control target
= control target key end

     0   :  { %11 = vsyncpa [#allocation3], 0  ;;  %s646_s0 = inlined_call_operand.hbm [shape: f32[8,16], index: 0, kind: input, shape index: {}]   ;;  %s647_s1 = inlined_call_operand.hbm [shape: f32[8,16], index: 1, kind: input, shape index: {}]   ;;  %s648_s2 = inlined_call_operand.hbm [shape: f32[32,32], index: 2, kind: input, shape index: {}]   ;;  %s649_s3 = inlined_call_operand.vmem [shape: f32[1,32], index: 3, kind: input, shape index: {}]   ;;  %s650_s4 = inlined_call_operand.hbm [shape: f32[32,32], index: 4, kind: input, shape index: {}]   ;;  %s651_s5 = inlined_call_operand.vmem [shape: f32[1,32], index: 5, kind: input, shape index: {}]   ;;  %s652_s6 = inlined_call_operand.hbm [shape: f32[8,32], index: 6, kind: output, shape index: {}]  }
   0x1   :  { %12 = vsyncpa [#allocation6], 0 }
   0x2   :  { %13 = vsyncpa [#allocation9], 0 }
   0x3   :  { %14 = vsyncpa [#allocation4], 0  ;;  %s532_s21 = smov [#allocation5]   ;;  %s533_s23 = smov [#allocation2]  }
   0x4   :  { %s31_s22 = sshll.u32 %s532_s21, 4  ;;  %s21_s24 = sshll.u32 %s533_s23, 4  ;;  %s32_s22 = int_to_ptr.vmem [resolvable:$true] %s31_s22  ;;  %s22_s24 = int_to_ptr.vmem [resolvable:$true] %s21_s24 }
   0x5   :  { %s414_s27 = scalar_lea.hbm %s647_s1, 128 }
   0x6   :  { %p415_p0 = scmp.ne.s32.totalorder %s647_s1, %s414_s27  ;;  %p418_p1 = scmp.lt.u32.totalorder %s414_s27, %s647_s1 }
   0x8   :  { %p420_p2 = pnand %p418_p1, %p415_p0 }
   0xa   :  { %423 = shalt.err (!%p420_p2)
}
   0xb   :  { %s424_s8 = scalar_lea.vmem %s32_s22, 128  ;;  %p429_p4 = scmp.lt.s32.totalorder %s32_s22, %s32_s22 }
   0xc   :  { %p425_p3 = scmp.ne.s32.totalorder %s32_s22, %s424_s8  ;;  %p430_p5 = scmp.lt.s32.totalorder %s424_s8, %s424_s8 }
   0xe   :  { %p431_p6 = por %p430_p5, %p429_p4 }
  0x10   :  { %p432_p7 = pnand %p431_p6, %p425_p3 }
  0x12   :  { %435 = shalt.err (!%p432_p7)
}
  0x13   :  { %34 = dma.hbm_to_vmem [thread:$0]  %s647_s1, 128, %s32_s22, [#allocation6]  }
  0x14   :  { %s436_s13 = scalar_lea.hbm %s646_s0, 128 }
  0x15   :  { %p437_p8 = scmp.ne.s32.totalorder %s646_s0, %s436_s13  ;;  %p440_p9 = scmp.lt.u32.totalorder %s436_s13, %s646_s0 }
  0x17   :  { %p442_p10 = pnand %p440_p9, %p437_p8 }
  0x19   :  { %445 = shalt.err (!%p442_p10)
}
  0x1a   :  { %s446_s18 = scalar_lea.vmem %s22_s24, 128  ;;  %p451_p12 = scmp.lt.s32.totalorder %s22_s24, %s22_s24 }
  0x1b   :  { %p447_p11 = scmp.ne.s32.totalorder %s22_s24, %s446_s18  ;;  %p452_p13 = scmp.lt.s32.totalorder %s446_s18, %s446_s18 }
  0x1d   :  { %p453_p0 = por %p452_p13, %p451_p12 }
  0x1f   :  { %p454_p1 = pnand %p453_p0, %p447_p11 }
  0x21   :  { %457 = shalt.err (!%p454_p1)
}
  0x22   :  { %24 = dma.hbm_to_vmem [thread:$0]  %s646_s0, 128, %s22_s24, [#allocation3]  }
  0x23   :  { %s534_s20 = smov [#allocation7]   ;;  %s458_s25 = scalar_lea.hbm %s648_s2, 512 }
  0x24   :  { %s40_s21 = sshll.u32 %s534_s20, 4  ;;  %p459_p2 = scmp.ne.s32.totalorder %s648_s2, %s458_s25  ;;  %s41_s21 = int_to_ptr.vmem [resolvable:$true] %s40_s21 }
  0x25   :  { %p462_p3 = scmp.lt.u32.totalorder %s458_s25, %s648_s2 }
  0x27   :  { %p464_p4 = pnand %p462_p3, %p459_p2 }
  0x29   :  { %467 = shalt.err (!%p464_p4)
}
  0x2a   :  { %s468_s30 = scalar_lea.vmem %s41_s21, 512  ;;  %p473_p6 = scmp.lt.s32.totalorder %s41_s21, %s41_s21 }
  0x2b   :  { %p469_p5 = scmp.ne.s32.totalorder %s41_s21, %s468_s30  ;;  %p474_p7 = scmp.lt.s32.totalorder %s468_s30, %s468_s30 }
  0x2d   :  { %p475_p8 = por %p474_p7, %p473_p6 }
  0x2f   :  { %p476_p9 = pnand %p475_p8, %p469_p5 }
  0x31   :  { %479 = shalt.err (!%p476_p9)
}
  0x32   :  { %s535_s0 = smov 128   ;;  %s536_s24 = smov 8  }
  0x33   :  { %46 = dma.hbm_to_vmem [thread:$0]  %s648_s2, 512, %s41_s21, [#allocation6], %s535_s0, %s535_s0, %s536_s24  }
  0x34   :  { %s537_s9 = smov [#allocation8]   ;;  %s480_s13 = scalar_lea.hbm %s650_s4, 512 }
  0x35   :  { %s54_s10 = sshll.u32 %s537_s9, 4  ;;  %p481_p10 = scmp.ne.s32.totalorder %s650_s4, %s480_s13  ;;  %s55_s10 = int_to_ptr.vmem [resolvable:$true] %s54_s10 }
  0x36   :  { %p484_p11 = scmp.lt.u32.totalorder %s480_s13, %s650_s4 }
  0x38   :  { %p486_p12 = pnand %p484_p11, %p481_p10 }
  0x3a   :  { %489 = shalt.err (!%p486_p12)
}
  0x3b   :  { %s490_s18 = scalar_lea.vmem %s55_s10, 512  ;;  %p495_p0 = scmp.lt.s32.totalorder %s55_s10, %s55_s10 }
  0x3c   :  { %p491_p13 = scmp.ne.s32.totalorder %s55_s10, %s490_s18  ;;  %p496_p1 = scmp.lt.s32.totalorder %s490_s18, %s490_s18 }
  0x3e   :  { %p497_p2 = por %p496_p1, %p495_p0 }
  0x40   :  { %p498_p3 = pnand %p497_p2, %p491_p13 }
  0x42   :  { %501 = shalt.err (!%p498_p3)
}
  0x43   :  { %60 = dma.hbm_to_vmem [thread:$0]  %s650_s4, 512, %s55_s10, [#allocation9], %s535_s0, %s535_s0, %s536_s24  }
  0x44   :  { %524 = dma.done.wait [#allocation3], 128  }
  0x45   :  { %525 = vsyncadd [#allocation3], 4294967168 }
  0x46   :  { %526 = dma.done.wait [#allocation6], 640  }
  0x47   :  { %527 = vsyncadd [#allocation6], 4294966656 }
  0x48   :  { %528 = dma.done.wait [#allocation9], 512  }
  0x49   :  { %529 = vsyncadd [#allocation9], 4294966784  ;;  %v538_v0 = vmov 0.0|0.0   ;;  %vm539_vm0 = vmmov 0   ;;  %v540_v1 = vmov 0.0   ;;  %v79_v2 = vld [vmem:[#allocation7 + $0x10] sm:$0xff] }
  0x4a   :  { %388 = vmatprep.subr.bf16.mxu1 %v538_v0  ;;  %367 = vmatprep.mubr.msk.f32.mxu1 %vm539_vm0, %v540_v1  ;;  %v80_v3 = vld [vmem:[#allocation7 + $0x18] sm:$0xff]  ;;  %v76_v5 = vld [vmem:[#allocation7] sm:$0xff]  ;;  %v77_v6 = vld [vmem:[#allocation7 + $0x8] sm:$0xff]  ;;  %vm81_vm1 = vcmask 130048   ;;  %vm254_vm2 = vcmask 261120   ;;  %s541_s22 = smov [#allocation10]  }
  0x4b   :  { %394 = vmatprep.subr.bf16.mxu0 %v538_v0  ;;  %385 = vmatprep.mubr.msk.f32.mxu0 %vm539_vm0, %v540_v1  ;;  %v389_v4 = vpack.c.bf16 %v80_v3, %v79_v2  ;;  %v78_v7 = vld [vmem:[#allocation5] sm:$0xff]  ;;  %v392_v8 = vpack.c.bf16 %v77_v6, %v76_v5  ;;  %v75_v9 = vld [vmem:[#allocation2] sm:$0xff]  ;;  %v243_v10 = vld [vmem:[#allocation8] sm:$0xff]  ;;  %s335_s23 = sshll.u32 %s541_s22, 4  ;;  %s336_s23 = int_to_ptr.vmem [resolvable:$true] %s335_s23 }
  0x4c   :  { %v244_v11 = vld [vmem:[#allocation8 + $0x8] sm:$0xff]  ;;  %v245_v13 = vld [vmem:[#allocation8 + $0x10] sm:$0xff]  ;;  %v246_v14 = vld [vmem:[#allocation8 + $0x18] sm:$0xff]  ;;  %p507_p5 = scmp.lt.s32.totalorder %s336_s23, %s336_s23 }
  0x4d   :  { %390 = vmatpush3.bf16.msra.mxu1 %v389_v4  ;;  %v395_v12 = vpack.c.bf16 %v244_v11, %v243_v10  ;;  %v398_v15 = vpack.c.bf16 %v246_v14, %v245_v13  ;;  %v348_v19 = vld [vmem:[%s649_s3] ss:$0 sm:$0xff]  ;;  %s502_s3 = scalar_lea.vmem %s336_s23, 128 }
  0x4e   :  { %391 = vmatprep.subr.bf16.mxu1 %v538_v0  ;;  %v350_v28 = vld [vmem:[%s651_s5] ss:$0 sm:$0xff]  ;;  %p503_p4 = scmp.ne.s32.totalorder %s336_s23, %s502_s3  ;;  %p508_p6 = scmp.lt.s32.totalorder %s502_s3, %s502_s3 }
  0x4f   :  { %396 = vmatpush3.bf16.msra.mxu0 %v395_v12 }
  0x50   :  { %368 = vmatmul.mubr.msk.f32.vlgmr.msra.gmra.mrb[0].mxu1 %vm81_vm1, %v78_v7  ;;  %397 = vmatprep.subr.bf16.mxu0 %v538_v0  ;;  %p509_p7 = por %p508_p6, %p507_p5 }
  0x51   :  { %393 = vmatpush3.bf16.msra.mxu1 %v392_v8  ;;  %374 = vmatprep.mubr.msk.f32.mxu1 %vm539_vm0, %v540_v1 }
  0x52   :  { %p510_p8 = pnand %p509_p7, %p503_p4 }
  0x53   :  { %399 = vmatpush3.bf16.msra.mxu0 %v398_v15 }
  0x54   :  { %375 = vmatmul.mubr.msk.f32.vlgmr.msra.gmra.mrb[2].mxu1 %vm81_vm1, %v75_v9 }
 0x123   :  { %v151_v16 = vpop.f32.mrb[0].mxu1 }
 0x124   :  { %v369_v17 = vpop.f32.mrb[1].mxu1 }
 0x127   :  { %v224_v18 = vpop.f32.mrb[2].mxu1 }
 0x128   :  { %v225_v20 = vadd.f32 %v224_v18, %v151_v16  ;;  %v376_v21 = vpop.f32.mrb[3].mxu1 }
 0x12a   :  { %v235_v22 = vadd.f32 %v348_v19, %v225_v20 }
 0x12c   :  { %v349_v23 = vmul.f32 -1.442695, %v235_v22 }
 0x12e   :  { %410 = vpow2.f32 %v349_v23 }
 0x138   :  { %v411_v24 = vpop.eup %410 }
 0x139   :  { %v239_v25 = vadd.f32 1.0, %v411_v24 }
 0x13b   :  { %412 = vrcp.f32 %v239_v25 }
 0x145   :  { %v413_v26 = vpop.eup %412 }
 0x146   :  { %v242_v27 = vmul.f32 %v413_v26, %v235_v22 }
 0x148   :  { %386 = vmatmul.mubr.msk.f32.vlgmr.msra.gmra.mrb[0].mxu0 %vm254_vm2, %v242_v27 }
 0x21b   :  { %v324_v29 = vpop.f32.mrb[0].mxu0 }
 0x21c   :  { %v325_v30 = vadd.f32 %v350_v28, %v324_v29  ;;  %v387_v31 = vpop.f32.mrb[1].mxu0 }
 0x21e   :  { %328 = vst.msk [vmem:[#allocation10] sm:$0xff] %vm254_vm2, %v325_v30 }
 0x21f   :  { %513 = shalt.err (!%p510_p8)
}
 0x220   :  { %s514_s27 = scalar_lea.hbm %s652_s6, 128 }
 0x221   :  { %p515_p9 = scmp.ne.s32.totalorder %s652_s6, %s514_s27  ;;  %p518_p10 = scmp.lt.u32.totalorder %s514_s27, %s652_s6 }
 0x223   :  { %p520_p11 = pnand %p518_p10, %p515_p9 }
 0x225   :  { %523 = shalt.err (!%p520_p11)
}
 0x226   :  { %338 = dma.vmem_to_hbm [thread:$0]  %s336_s23, 128, %s652_s6, [#allocation4]  }
 0x227   :  { %530 = dma.done.wait [#allocation4], 128  }
 0x228   :  { %531 = vsyncadd [#allocation4], 4294967168 }
 0x229   :  { %342 = vsyncpa [#allocation3], 1 }
 0x22a   :  { %343 = vsyncpa [#allocation6], 1 }
 0x22b   :  { %344 = vsyncpa [#allocation9], 1 }
 0x22c   :  { %345 = vsyncpa [#allocation4], 1 }

</bundles_post_ra>
